<compile_context>
chip_gen: v7x
topology: tpu7x:2x2x1
jax: 0.10.0
libtpu: 0.0.40
codegen_flags: <defaults>
</compile_context>

<pallas_src>
import math

import jax
import jax.numpy as jnp
from jax.experimental import pallas as pl
from jax.experimental.pallas import tpu as pltpu


N_HID = 64
N_OUT = 3
N_OUT_PAD = 128  # lane-dense padded output width


def _round_up(n, m):
    return ((n + m - 1) // m) * m


def _policy_kernel(x_ref, w1_ref, b1_ref, w2_ref, b2_ref, o_ref):
    # Layer 1 on the VPU: [tb, 1] * [1, 64] + [1, 64] -> ReLU  (broadcast FMA,
    # avoids a degenerate K=1 MXU pass).
    h = jnp.maximum(x_ref[...] * w1_ref[...] + b1_ref[...], 0.0)
    # Layer 2 on the MXU: [tb, 64] @ [64, 128] + [1, 128]
    y = jnp.dot(h, w2_ref[...], preferred_element_type=jnp.float32) + b2_ref[...]
    # Sigmoid: exp on EUP, reciprocal on EUP (approx) -> VALU stays free.
    o_ref[...] = pl.reciprocal(1.0 + jnp.exp(-y), approx=True)


def policy_net_forward(x, w1, b1, w2, b2, *, tile_b=1024):
    """x: [B, 1] f32. Returns [B, 3] f32 in (0, 1)."""
    B = x.shape[0]
    x = x.astype(jnp.float32)

    # Zero-pad output features 3 -> 128 so stores are unmasked / lane-dense.
    w2p = jnp.zeros((N_HID, N_OUT_PAD), jnp.float32).at[:, :N_OUT].set(w2)
    b2p = jnp.zeros((1, N_OUT_PAD), jnp.float32).at[:, :N_OUT].set(
        b2.reshape(1, N_OUT)
    )

    # Batch tiling: at least 8 rows (sublane multiple), at most tile_b.
    tb = min(tile_b, _round_up(B, 8))
    b_pad = _round_up(B, tb)
    xp = jnp.zeros((b_pad, 1), jnp.float32).at[:B].set(x)
    grid = (b_pad // tb,)

    out_padded = pl.pallas_call(
        _policy_kernel,
        out_shape=jax.ShapeDtypeStruct((b_pad, N_OUT_PAD), jnp.float32),
        grid=grid,
        in_specs=[
            pl.BlockSpec((tb, 1), lambda i: (i, 0)),          # x tile
            pl.BlockSpec((1, N_HID), lambda i: (0, 0)),       # W1 (resident)
            pl.BlockSpec((1, N_HID), lambda i: (0, 0)),       # b1 (resident)
            pl.BlockSpec((N_HID, N_OUT_PAD), lambda i: (0, 0)),  # W2 padded
            pl.BlockSpec((1, N_OUT_PAD), lambda i: (0, 0)),   # b2 padded
        ],
        out_specs=pl.BlockSpec((tb, N_OUT_PAD), lambda i: (i, 0)),
        compiler_params=pltpu.CompilerParams(
            dimension_semantics=("parallel",),
        ),
    )(xp, w1, b1, w2p, b2p)

    # Drop batch padding and padded output lanes before returning to callers.
    return out_padded[:B, :N_OUT]


def init_params(key):
    """Deterministic parameter init mirroring PyTorch nn.Linear defaults
    (uniform in +/- 1/sqrt(fan_in)), plus the custom output-bias init."""
    k1, k2, k3 = jax.random.split(key, 3)

    # Layer 1: Linear(1, 64) -> W1 [1, 64], b1 [1, 64]
    bound1 = 1.0 / math.sqrt(1.0)
    w1 = jax.random.uniform(k1, (1, N_HID), jnp.float32, -bound1, bound1)
    b1 = jax.random.uniform(k2, (1, N_HID), jnp.float32, -bound1, bound1)

    # Layer 2: Linear(64, 3) -> W2 [64, 3]
    bound2 = 1.0 / math.sqrt(float(N_HID))
    w2 = jax.random.uniform(k3, (N_HID, N_OUT), jnp.float32, -bound2, bound2)

    # Custom output bias: sigmoid(b2) ~= [1.0, 0.1, 0.2] / 2
    init_pid = jnp.array([1.0, 0.1, 0.2], jnp.float32)
    target = jnp.clip(init_pid / 2.0, 1e-05, 1.0 - 1e-05)
    b2 = jnp.log(target / (1.0 - target)).reshape(1, N_OUT)

    return w1, b1, w2, b2


def _reference(x, w1, b1, w2, b2):
    h = jnp.maximum(x @ w1 + b1, 0.0)
    return jax.nn.sigmoid(h @ w2 + b2)


if __name__ == "__main__":
    key = jax.random.PRNGKey(0)
    w1, b1, w2, b2 = init_params(key)

    # Case 1: typical usage — dummy input [[0.0]], batch=2.
    x0 = jnp.zeros((2, 1), jnp.float32)
    out0 = policy_net_forward(x0, w1, b1, w2, b2)
    jax.block_until_ready(out0)
    ref0 = _reference(x0, w1, b1, w2, b2)
    assert out0.shape == (2, 3)
    assert bool(jnp.all((out0 > 0.0) & (out0 < 1.0)))
    assert jnp.allclose(out0, ref0, atol=2e-3), (out0, ref0)

    # Case 2: ragged batch with a small tile to exercise the grid + padding.
    x1 = jax.random.normal(jax.random.PRNGKey(1), (37, 1), jnp.float32)
    out1 = policy_net_forward(x1, w1, b1, w2, b2, tile_b=16)
    jax.block_until_ready(out1)
    ref1 = _reference(x1, w1, b1, w2, b2)
    assert out1.shape == (37, 3)
    assert jnp.allclose(out1, ref1, atol=2e-3), (out1, ref1)

    print("KERNEL_OK")
</pallas_src>

<mosaic_0001>
module attributes {stable_mosaic.version = 11 : i64} {
  func.func @_policy_kernel(%arg0: i32, %arg1: memref<8x1xf32, #tpu.memory_space<vmem>>, %arg2: memref<1x64xf32, #tpu.memory_space<vmem>>, %arg3: memref<1x64xf32, #tpu.memory_space<vmem>>, %arg4: memref<64x128xf32, #tpu.memory_space<vmem>>, %arg5: memref<1x128xf32, #tpu.memory_space<vmem>>, %arg6: memref<8x128xf32, #tpu.memory_space<vmem>>) attributes {dimension_semantics = [#tpu.dimension_semantics<parallel>], iteration_bounds = array<i64: 1>, scalar_prefetch = 0 : i64, scratch_operands = 0 : i64, tpu.core_type = #tpu.core_type<tc>, window_params = [{transform_indices = @transform_0, window_bounds = array<i64: 8, 1>}, {pipeline_mode = #tpu.pipeline_mode<synchronous>, transform_indices = @transform_1, window_bounds = array<i64: 1, 64>}, {pipeline_mode = #tpu.pipeline_mode<synchronous>, transform_indices = @transform_2, window_bounds = array<i64: 1, 64>}, {pipeline_mode = #tpu.pipeline_mode<synchronous>, transform_indices = @transform_3, window_bounds = array<i64: 64, 128>}, {pipeline_mode = #tpu.pipeline_mode<synchronous>, transform_indices = @transform_4, window_bounds = array<i64: 1, 128>}, {transform_indices = @transform_5, window_bounds = array<i64: 8, 128>}]} {
    %c0 = arith.constant 0 : index
    %c0_0 = arith.constant 0 : index
    %0 = vector.load %arg1[%c0, %c0_0] : memref<8x1xf32, #tpu.memory_space<vmem>>, vector<8x1xf32>
    %c0_1 = arith.constant 0 : index
    %c0_2 = arith.constant 0 : index
    %1 = vector.load %arg2[%c0_1, %c0_2] : memref<1x64xf32, #tpu.memory_space<vmem>>, vector<1x64xf32>
    %2 = vector.broadcast %0 : vector<8x1xf32> to vector<8x64xf32>
    %3 = vector.broadcast %1 : vector<1x64xf32> to vector<8x64xf32>
    %4 = arith.mulf %2, %3 : vector<8x64xf32>
    %c0_3 = arith.constant 0 : index
    %c0_4 = arith.constant 0 : index
    %5 = vector.load %arg3[%c0_3, %c0_4] : memref<1x64xf32, #tpu.memory_space<vmem>>, vector<1x64xf32>
    %6 = vector.broadcast %5 : vector<1x64xf32> to vector<8x64xf32>
    %7 = arith.addf %4, %6 : vector<8x64xf32>
    %cst = arith.constant 0.000000e+00 : f32
    %8 = vector.broadcast %cst : f32 to vector<8x64xf32>
    %9 = arith.maximumf %7, %8 : vector<8x64xf32>
    %c0_5 = arith.constant 0 : index
    %c0_6 = arith.constant 0 : index
    %10 = vector.load %arg4[%c0_5, %c0_6] : memref<64x128xf32, #tpu.memory_space<vmem>>, vector<64x128xf32>
    %cst_7 = arith.constant dense<0.000000e+00> : vector<8x128xf32>
    %11 = tpu.matmul %9, %10, %cst_7 {dimension_numbers = #tpu.dot_dimension_numbers<[1], [0], [0], [1], [0, 0, 1, 1], [], []>} : vector<8x64xf32>, vector<64x128xf32>, vector<8x128xf32> -> vector<8x128xf32>
    %c0_8 = arith.constant 0 : index
    %c0_9 = arith.constant 0 : index
    %12 = vector.load %arg5[%c0_8, %c0_9] : memref<1x128xf32, #tpu.memory_space<vmem>>, vector<1x128xf32>
    %13 = vector.broadcast %12 : vector<1x128xf32> to vector<8x128xf32>
    %14 = arith.addf %11, %13 : vector<8x128xf32>
    %cst_10 = arith.constant 0.000000e+00 : f32
    %15 = vector.broadcast %cst_10 : f32 to vector<8x128xf32>
    %16 = arith.subf %15, %14 : vector<8x128xf32>
    %17 = math.exp %16 : vector<8x128xf32>
    %cst_11 = arith.constant 1.000000e+00 : f32
    %18 = vector.broadcast %cst_11 : f32 to vector<8x128xf32>
    %19 = arith.addf %18, %17 : vector<8x128xf32>
    %20 = tpu.reciprocal %19 {approx = true} : vector<8x128xf32> -> vector<8x128xf32>
    %c0_12 = arith.constant 0 : index
    %c0_13 = arith.constant 0 : index
    %21 = vector.load %arg6[%c0_12, %c0_13] : memref<8x128xf32, #tpu.memory_space<vmem>>, vector<8x128xf32>
    tpu.vector_store %arg6[%c0_12, %c0_13], %20 {strides = array<i32>} : memref<8x128xf32, #tpu.memory_space<vmem>>, vector<8x128xf32>,
    return
  }
  func.func @transform_0(%arg0: i32) -> (i32, i32) {
    %c0_i32 = arith.constant 0 : i32
    %c0_i32_0 = arith.constant 0 : i32
    return %arg0, %c0_i32 : i32, i32
  }
  func.func @transform_1(%arg0: i32) -> (i32, i32) {
    %c0_i32 = arith.constant 0 : i32
    %c0_i32_0 = arith.constant 0 : i32
    %c0_i32_1 = arith.constant 0 : i32
    return %c0_i32, %c0_i32_0 : i32, i32
  }
  func.func @transform_2(%arg0: i32) -> (i32, i32) {
    %c0_i32 = arith.constant 0 : i32
    %c0_i32_0 = arith.constant 0 : i32
    %c0_i32_1 = arith.constant 0 : i32
    return %c0_i32, %c0_i32_0 : i32, i32
  }
  func.func @transform_3(%arg0: i32) -> (i32, i32) {
    %c0_i32 = arith.constant 0 : i32
    %c0_i32_0 = arith.constant 0 : i32
    %c0_i32_1 = arith.constant 0 : i32
    return %c0_i32, %c0_i32_0 : i32, i32
  }
  func.func @transform_4(%arg0: i32) -> (i32, i32) {
    %c0_i32 = arith.constant 0 : i32
    %c0_i32_0 = arith.constant 0 : i32
    %c0_i32_1 = arith.constant 0 : i32
    return %c0_i32, %c0_i32_0 : i32, i32
  }
  func.func @transform_5(%arg0: i32) -> (i32, i32) {
    %c0_i32 = arith.constant 0 : i32
    %c0_i32_0 = arith.constant 0 : i32
    return %arg0, %c0_i32 : i32, i32
  }
}

</mosaic_0001>

<bundles_post_ra>
// kernel: tpu_custom_call.1
= control target key start
LH: loop header
LB: loop body
LE: loop exit
PB: predicated region body
PF: predicated region fallthrough
CT: control target
= control target key end

     0   :  { %10 = vsyncpa [#allocation3], 0  ;;  %s347_s0 = inlined_call_operand.vmem [shape: f32[8,1], index: 0, kind: input, shape index: {}]   ;;  %s348_s1 = inlined_call_operand.vmem [shape: f32[1,64], index: 1, kind: input, shape index: {}]   ;;  %s349_s2 = inlined_call_operand.vmem [shape: f32[1,64], index: 2, kind: input, shape index: {}]   ;;  %s350_s3 = inlined_call_operand.hbm [shape: f32[64,128], index: 3, kind: input, shape index: {}]   ;;  %s351_s4 = inlined_call_operand.vmem [shape: f32[1,128], index: 4, kind: input, shape index: {}]   ;;  %s352_s5 = inlined_call_operand.hbm [shape: f32[8,128], index: 5, kind: output, shape index: {}]  }
   0x1   :  { %11 = vsyncpa [#allocation4], 0  ;;  %s273_s18 = smov [#allocation2]   ;;  %s225_s22 = scalar_lea.hbm %s350_s3, 1024 }
   0x2   :  { %s23_s19 = sshll.u32 %s273_s18, 4  ;;  %p226_p0 = scmp.ne.s32.totalorder %s350_s3, %s225_s22  ;;  %s24_s19 = int_to_ptr.vmem [resolvable:$true] %s23_s19 }
   0x3   :  { %p229_p1 = scmp.lt.u32.totalorder %s225_s22, %s350_s3 }
   0x5   :  { %p231_p2 = pnand %p229_p1, %p226_p0 }
   0x7   :  { %234 = shalt.err (!%p231_p2)
}
   0x8   :  { %s235_s27 = scalar_lea.vmem %s24_s19, 1024  ;;  %p240_p4 = scmp.lt.s32.totalorder %s24_s19, %s24_s19 }
   0x9   :  { %p236_p3 = scmp.ne.s32.totalorder %s24_s19, %s235_s27  ;;  %p241_p5 = scmp.lt.s32.totalorder %s235_s27, %s235_s27 }
   0xb   :  { %p242_p6 = por %p241_p5, %p240_p4 }
   0xd   :  { %p243_p7 = pnand %p242_p6, %p236_p3 }
   0xf   :  { %246 = shalt.err (!%p243_p7)
}
  0x10   :  { %s274_s28 = smov 128   ;;  %s275_s29 = smov 8  }
  0x11   :  { %29 = dma.hbm_to_vmem [thread:$0]  %s350_s3, 1024, %s24_s19, [#allocation3], %s274_s28, %s274_s28, %s275_s29  }
  0x12   :  { %269 = dma.done.wait [#allocation3], 1024  }
  0x13   :  { %270 = vsyncadd [#allocation3], 4294966272  ;;  %v276_v0 = vmov 0   ;;  %v277_v1 = vmov 0.0|0.0   ;;  %v35_v2 = vld [vmem:[%s347_s0] sm:$0xff]  ;;  %v59_v4 = vld [vmem:[#allocation2 + $0x8] sm:$0xff] }
  0x14   :  { %220 = vset.pattern.permute.xlu0 %v276_v0  ;;  %200 = vmatprep.subr.bf16.mxu0 %v277_v1  ;;  %v58_v3 = vld [vmem:[#allocation2] sm:$0xff]  ;;  %v60_v6 = vld [vmem:[#allocation2 + $0x10] sm:$0xff]  ;;  %v61_v7 = vld [vmem:[#allocation2 + $0x18] sm:$0xff]  ;;  %vm278_vm0 = vmmov 0   ;;  %v279_v11 = vmov 0.0   ;;  %vm73_vm1 = vcmask 523264  }
  0x15   :  { %39 = vperm.xlu0 %220, %v35_v2   ;;  %v201_v5 = vpack.c.bf16 %v59_v4, %v58_v3  ;;  %v204_v8 = vpack.c.bf16 %v61_v7, %v60_v6  ;;  %v62_v9 = vld [vmem:[#allocation2 + $0x20] sm:$0xff]  ;;  %v63_v10 = vld [vmem:[#allocation2 + $0x28] sm:$0xff]  ;;  %197 = vmatprep.mubr.msk.f32.mxu0 %vm278_vm0, %v279_v11  ;;  %v64_v13 = vld [vmem:[#allocation2 + $0x30] sm:$0xff] }
  0x16   :  { %v207_v12 = vpack.c.bf16 %v63_v10, %v62_v9  ;;  %v65_v14 = vld [vmem:[#allocation2 + $0x38] sm:$0xff]  ;;  %v168_v16 = vld [vmem:[%s348_s1] ss:$0 sm:$0xff]  ;;  %s280_s1 = smov [#allocation5]  }
  0x17   :  { %202 = vmatpush3.bf16.msra.mxu0 %v201_v5  ;;  %v210_v15 = vpack.c.bf16 %v65_v14, %v64_v13  ;;  %v169_v17 = vld [vmem:[%s349_s2] ss:$0 sm:$0xff]  ;;  %s159_s2 = sshll.u32 %s280_s1, 4  ;;  %s160_s2 = int_to_ptr.vmem [resolvable:$true] %s159_s2 }
  0x18   :  { %203 = vmatprep.subr.bf16.mxu0 %v277_v1  ;;  %v170_v22 = vld [vmem:[%s351_s4] ss:$0 sm:$0xff]  ;;  %s247_s13 = scalar_lea.vmem %s160_s2, 128  ;;  %p252_p9 = scmp.lt.s32.totalorder %s160_s2, %s160_s2 }
  0x19   :  { %p248_p8 = scmp.ne.s32.totalorder %s160_s2, %s247_s13  ;;  %p253_p10 = scmp.lt.s32.totalorder %s247_s13, %s247_s13 }
  0x1b   :  { %205 = vmatpush3.bf16.msra.mxu0 %v204_v8  ;;  %p254_p11 = por %p253_p10, %p252_p9 }
  0x1c   :  { %206 = vmatprep.subr.bf16.mxu0 %v277_v1 }
  0x1d   :  { %p255_p12 = pnand %p254_p11, %p248_p8 }
  0x1f   :  { %208 = vmatpush3.bf16.msra.mxu0 %v207_v12 }
  0x20   :  { %209 = vmatprep.subr.bf16.mxu0 %v277_v1 }
  0x23   :  { %211 = vmatpush3.bf16.msra.mxu0 %v210_v15 }
  0x94   :  { %v40_v18 = vpop.permute.xlu0 %39 }
  0x95   :  { %v48_v19 = vmul.f32 %v168_v16, %v40_v18 }
  0x97   :  { %v56_v20 = vadd.f32 %v169_v17, %v48_v19 }
  0x99   :  { %v57_v21 = vmax.f32 %v56_v20, 0.0 }
  0x9b   :  { %198 = vmatmul.mubr.msk.f32.vlgmr.msra.gmra.mrb[0].mxu0 %vm73_vm1, %v57_v21 }
 0x16e   :  { %v143_v23 = vpop.f32.mrb[0].mxu0 }
 0x16f   :  { %v144_v24 = vadd.f32 %v170_v22, %v143_v23  ;;  %v199_v25 = vpop.f32.mrb[1].mxu0 }
 0x171   :  { %v147_v26 = vsub.f32 0.0, %v144_v24 }
 0x173   :  { %v148_v27 = vmul.f32 1.442695, %v147_v26 }
 0x175   :  { %221 = vpow2.f32 %v148_v27 }
 0x17f   :  { %v222_v28 = vpop.eup %221 }
 0x180   :  { %v150_v29 = vadd.f32 1.0, %v222_v28 }
 0x182   :  { %223 = vrcp.f32 %v150_v29 }
 0x18c   :  { %v224_v30 = vpop.eup %223 }
 0x18d   :  { %152 = vst [vmem:[#allocation5] sm:$0xff] %v224_v30 }
 0x18e   :  { %258 = shalt.err (!%p255_p12)
}
 0x18f   :  { %s259_s15 = scalar_lea.hbm %s352_s5, 128 }
 0x190   :  { %p260_p13 = scmp.ne.s32.totalorder %s352_s5, %s259_s15  ;;  %p263_p0 = scmp.lt.u32.totalorder %s259_s15, %s352_s5 }
 0x192   :  { %p265_p1 = pnand %p263_p0, %p260_p13 }
 0x194   :  { %268 = shalt.err (!%p265_p1)
}
 0x195   :  { %162 = dma.vmem_to_hbm [thread:$0]  %s160_s2, 128, %s352_s5, [#allocation4]  }
 0x196   :  { %271 = dma.done.wait [#allocation4], 128  }
 0x197   :  { %272 = vsyncadd [#allocation4], 4294967168 }
 0x198   :  { %166 = vsyncpa [#allocation3], 1 }
 0x199   :  { %167 = vsyncpa [#allocation4], 1 }

</bundles_post_ra>
